<compile_context>
chip_gen: v7x
topology: tpu7x:2x2x1
jax: 0.10.0
libtpu: 0.0.40
codegen_flags: <defaults>
</compile_context>

<pallas_src>
import functools

import jax
import jax.numpy as jnp
from jax.experimental import pallas as pl
from jax.experimental.pallas import tpu as pltpu


def _fused_conv2d_kernel(x_ref, w_ref, b_ref, o_ref, col_ref, *, kh, kw, c, w_pad):
    """One grid step = `batch_block` batch elements.

    x_ref   : (NB, C, H_pad*W_pad + KW-1)  flattened padded input (VMEM)
    w_ref   : (O, KH*KW*C)                 repacked weight (VMEM)
    b_ref   : (O, 1)                       bias, f32 (VMEM)
    o_ref   : (NB, O, h_out*W_pad)         NCHW-flat output (VMEM)
    col_ref : (KH*KW*C, h_out*W_pad)       im2col scratch (VMEM)
    """
    length = col_ref.shape[1]                  # h_out * W_pad
    w_mat = w_ref[...]                         # hoisted: loaded once per step
    bias = b_ref[...]                          # (O, 1), broadcasts along lanes

    for b in range(x_ref.shape[0]):            # static unroll over batch block
        xb = x_ref[b]                          # (C, flat_len)
        for i in range(kh):
            for j in range(kw):
                k = i * kw + j
                off = i * w_pad + j
                # Contiguous lane slice == all spatial positions for tap (i,j).
                col_ref[k * c:(k + 1) * c, :] = xb[:, off:off + length]
        # Single K = KH*KW*C matmul on the MXU, N = h_out*W_pad lane-dense.
        acc = jnp.dot(w_mat, col_ref[...], preferred_element_type=jnp.float32)
        o_ref[b] = (acc + bias).astype(o_ref.dtype)


def conv2d_pallas(x_nchw, weight_oihw, bias_o, stride=(1, 1), padding=(1, 1),
                  *, batch_block=None, use_bf16_mxu=False):
    """Full Conv2d (all output channels) with a single fused Pallas kernel."""
    n, c, h, w = x_nchw.shape
    o, c_w, kh, kw = weight_oihw.shape
    assert c_w == c
    sh, sw = stride
    ph, pw = padding
    if (sh, sw) != (1, 1):
        # TODO(synk): general stride (>1) support; the module configuration
        # exercised here (stride=1, padding=1) uses the stride-1 fast path.
        raise NotImplementedError("conv2d_pallas currently implements stride=1")

    h_pad, w_pad = h + 2 * ph, w + 2 * pw
    h_out = h_pad - kh + 1
    w_out = w_pad - kw + 1
    length = h_out * w_pad                      # lane-dense spatial extent
    flat_len = h_pad * w_pad + (kw - 1)         # +kw-1 keeps the last tap slice in-bounds

    compute_dtype = jnp.bfloat16 if use_bf16_mxu else x_nchw.dtype

    # ---- Glue, hoisted: executed once per call (not once per part). ----
    x_pad = jnp.pad(x_nchw, ((0, 0), (0, 0), (ph, ph), (pw, pw)))
    x_flat = x_pad.reshape(n, c, h_pad * w_pad)
    x_flat = jnp.pad(x_flat, ((0, 0), (0, 0), (0, kw - 1))).astype(compute_dtype)

    # (O, C, KH, KW) -> (O, KH, KW, C) -> (O, KH*KW*C); row order matches the
    # order in which the kernel fills col_ref ((i*KW + j)*C + c).
    w_mat = jnp.transpose(weight_oihw, (0, 2, 3, 1)).reshape(o, kh * kw * c)
    w_mat = w_mat.astype(compute_dtype)

    if bias_o is None:
        bias_o = jnp.zeros((o,), jnp.float32)
    b2d = bias_o.astype(jnp.float32).reshape(o, 1)

    # ---- Batch blocking: whole batch per step when it fits comfortably. ----
    if batch_block is None:
        itemsize = jnp.dtype(compute_dtype).itemsize
        per_batch_bytes = (c * flat_len + o * length) * itemsize
        budget = 8 * 1024 * 1024                # conservative (double-buffered)
        batch_block = max(1, min(n, budget // max(per_batch_bytes, 1)))
    while n % batch_block:
        batch_block -= 1
    grid = (n // batch_block,)

    kernel = functools.partial(_fused_conv2d_kernel, kh=kh, kw=kw, c=c, w_pad=w_pad)

    out_flat = pl.pallas_call(
        kernel,
        out_shape=jax.ShapeDtypeStruct((n, o, length), x_nchw.dtype),
        grid_spec=pltpu.PrefetchScalarGridSpec(
            num_scalar_prefetch=0,
            grid=grid,
            in_specs=[
                pl.BlockSpec((batch_block, c, flat_len), lambda b: (b, 0, 0)),
                pl.BlockSpec((o, kh * kw * c), lambda b: (0, 0)),
                pl.BlockSpec((o, 1), lambda b: (0, 0)),
            ],
            out_specs=pl.BlockSpec((batch_block, o, length), lambda b: (b, 0, 0)),
            scratch_shapes=[pltpu.VMEM((kh * kw * c, length), compute_dtype)],
        ),
        compiler_params=pltpu.CompilerParams(
            dimension_semantics=("parallel",)),
    )(x_flat, w_mat, b2d)

    # NCHW-flat -> NCHW; drop the wrap-around columns [w_out, W_pad).
    return out_flat.reshape(n, o, h_out, w_pad)[:, :, :, :w_out]


def split_conv2d(x_nchw, weight_oihw, bias_o, out_channels_per_part,
                 stride=(1, 1), padding=(1, 1), **kwargs):
    """Mirror of SplitConv2d.forward.

    concat(partial_conv_i(x), dim=1) over an in-order channel partition is
    identical to the original conv, so we compute everything with ONE fused
    Pallas kernel: no duplicated input DMA, no per-part launches, no concat.
    """
    assert len(out_channels_per_part) >= 2
    assert all(p > 0 for p in out_channels_per_part)
    assert sum(out_channels_per_part) == weight_oihw.shape[0]
    return conv2d_pallas(x_nchw, weight_oihw, bias_o, stride, padding, **kwargs)


if __name__ == "__main__":
    # Original conv: Conv2d(in_channels=4, out_channels=8, kernel_size=3,
    #                       stride=1, padding=1, bias=True); SplitConv2d(conv, [3, 5])
    key = jax.random.PRNGKey(0)
    k_x, k_w, k_b = jax.random.split(key, 3)

    N, C, H, W = 2, 4, 16, 16
    O, KH, KW = 8, 3, 3
    parts = [3, 5]

    x = jax.random.normal(k_x, (N, C, H, W), dtype=jnp.float32)
    weight = jax.random.normal(k_w, (O, C, KH, KW), dtype=jnp.float32) * 0.1
    bias = jax.random.normal(k_b, (O,), dtype=jnp.float32) * 0.1

    fwd = jax.jit(lambda xx, ww, bb: split_conv2d(xx, ww, bb, parts,
                                                  stride=(1, 1), padding=(1, 1)))
    out = jax.block_until_ready(fwd(x, weight, bias))

    # Sanity check against XLA's conv (same semantics as the PyTorch module).
    ref = jax.lax.conv_general_dilated(
        x, weight, window_strides=(1, 1), padding=((1, 1), (1, 1)),
        dimension_numbers=("NCHW", "OIHW", "NCHW")) + bias[None, :, None, None]
    assert out.shape == (N, O, H, W)
    assert jnp.allclose(out, ref, atol=1e-4, rtol=1e-4)

    print("KERNEL_OK")
</pallas_src>

<mosaic_0001>
module attributes {stable_mosaic.version = 11 : i64} {
  func.func @_fused_conv2d_kernel(%arg0: i32, %arg1: memref<2x4x326xf32, #tpu.memory_space<vmem>>, %arg2: memref<8x36xf32, #tpu.memory_space<vmem>>, %arg3: memref<8x1xf32, #tpu.memory_space<vmem>>, %arg4: memref<2x8x288xf32, #tpu.memory_space<vmem>>, %arg5: memref<36x288xf32, #tpu.memory_space<vmem>>) attributes {dimension_semantics = [#tpu.dimension_semantics<parallel>], iteration_bounds = array<i64: 1>, scalar_prefetch = 0 : i64, scratch_operands = 1 : i64, tpu.core_type = #tpu.core_type<tc>, window_params = [{transform_indices = @transform_0, window_bounds = array<i64: 2, 4, 326>}, {pipeline_mode = #tpu.pipeline_mode<synchronous>, transform_indices = @transform_1, window_bounds = array<i64: 8, 36>}, {pipeline_mode = #tpu.pipeline_mode<synchronous>, transform_indices = @transform_2, window_bounds = array<i64: 8, 1>}, {transform_indices = @transform_3, window_bounds = array<i64: 2, 8, 288>}]} {
    %c0 = arith.constant 0 : index
    %c0_0 = arith.constant 0 : index
    %0 = vector.load %arg2[%c0, %c0_0] : memref<8x36xf32, #tpu.memory_space<vmem>>, vector<8x36xf32>
    %c0_1 = arith.constant 0 : index
    %c0_2 = arith.constant 0 : index
    %1 = vector.load %arg3[%c0_1, %c0_2] : memref<8x1xf32, #tpu.memory_space<vmem>>, vector<8x1xf32>
    %c0_3 = arith.constant 0 : index
    %c0_4 = arith.constant 0 : index
    %c0_5 = arith.constant 0 : index
    %2 = vector.load %arg1[%c0_3, %c0_4, %c0_5] : memref<2x4x326xf32, #tpu.memory_space<vmem>>, vector<1x4x326xf32>
    %3 = vector.shape_cast %2 : vector<1x4x326xf32> to vector<4x326xf32>
    %4 = vector.extract_strided_slice %3 {offsets = [0, 0], sizes = [4, 288], strides = [1, 1]} : vector<4x326xf32> to vector<4x288xf32>
    %c0_6 = arith.constant 0 : index
    %c0_7 = arith.constant 0 : index
    %5 = vector.load %arg5[%c0_6, %c0_7] : memref<36x288xf32, #tpu.memory_space<vmem>>, vector<4x288xf32>
    tpu.vector_store %arg5[%c0_6, %c0_7], %4 {strides = array<i32>} : memref<36x288xf32, #tpu.memory_space<vmem>>, vector<4x288xf32>,
    %6 = vector.extract_strided_slice %3 {offsets = [0, 1], sizes = [4, 288], strides = [1, 1]} : vector<4x326xf32> to vector<4x288xf32>
    %c4 = arith.constant 4 : index
    %c0_8 = arith.constant 0 : index
    %7 = vector.load %arg5[%c4, %c0_8] : memref<36x288xf32, #tpu.memory_space<vmem>>, vector<4x288xf32>
    tpu.vector_store %arg5[%c4, %c0_8], %6 {strides = array<i32>} : memref<36x288xf32, #tpu.memory_space<vmem>>, vector<4x288xf32>,
    %8 = vector.extract_strided_slice %3 {offsets = [0, 2], sizes = [4, 288], strides = [1, 1]} : vector<4x326xf32> to vector<4x288xf32>
    %c8 = arith.constant 8 : index
    %c0_9 = arith.constant 0 : index
    %9 = vector.load %arg5[%c8, %c0_9] : memref<36x288xf32, #tpu.memory_space<vmem>>, vector<4x288xf32>
    tpu.vector_store %arg5[%c8, %c0_9], %8 {strides = array<i32>} : memref<36x288xf32, #tpu.memory_space<vmem>>, vector<4x288xf32>,
    %10 = vector.extract_strided_slice %3 {offsets = [0, 18], sizes = [4, 288], strides = [1, 1]} : vector<4x326xf32> to vector<4x288xf32>
    %c12 = arith.constant 12 : index
    %c0_10 = arith.constant 0 : index
    %11 = vector.load %arg5[%c12, %c0_10] : memref<36x288xf32, #tpu.memory_space<vmem>>, vector<4x288xf32>
    tpu.vector_store %arg5[%c12, %c0_10], %10 {strides = array<i32>} : memref<36x288xf32, #tpu.memory_space<vmem>>, vector<4x288xf32>,
    %12 = vector.extract_strided_slice %3 {offsets = [0, 19], sizes = [4, 288], strides = [1, 1]} : vector<4x326xf32> to vector<4x288xf32>
    %c16 = arith.constant 16 : index
    %c0_11 = arith.constant 0 : index
    %13 = vector.load %arg5[%c16, %c0_11] : memref<36x288xf32, #tpu.memory_space<vmem>>, vector<4x288xf32>
    tpu.vector_store %arg5[%c16, %c0_11], %12 {strides = array<i32>} : memref<36x288xf32, #tpu.memory_space<vmem>>, vector<4x288xf32>,
    %14 = vector.extract_strided_slice %3 {offsets = [0, 20], sizes = [4, 288], strides = [1, 1]} : vector<4x326xf32> to vector<4x288xf32>
    %c20 = arith.constant 20 : index
    %c0_12 = arith.constant 0 : index
    %15 = vector.load %arg5[%c20, %c0_12] : memref<36x288xf32, #tpu.memory_space<vmem>>, vector<4x288xf32>
    tpu.vector_store %arg5[%c20, %c0_12], %14 {strides = array<i32>} : memref<36x288xf32, #tpu.memory_space<vmem>>, vector<4x288xf32>,
    %16 = vector.extract_strided_slice %3 {offsets = [0, 36], sizes = [4, 288], strides = [1, 1]} : vector<4x326xf32> to vector<4x288xf32>
    %c24 = arith.constant 24 : index
    %c0_13 = arith.constant 0 : index
    %17 = vector.load %arg5[%c24, %c0_13] : memref<36x288xf32, #tpu.memory_space<vmem>>, vector<4x288xf32>
    tpu.vector_store %arg5[%c24, %c0_13], %16 {strides = array<i32>} : memref<36x288xf32, #tpu.memory_space<vmem>>, vector<4x288xf32>,
    %18 = vector.extract_strided_slice %3 {offsets = [0, 37], sizes = [4, 288], strides = [1, 1]} : vector<4x326xf32> to vector<4x288xf32>
    %c28 = arith.constant 28 : index
    %c0_14 = arith.constant 0 : index
    %19 = vector.load %arg5[%c28, %c0_14] : memref<36x288xf32, #tpu.memory_space<vmem>>, vector<4x288xf32>
    tpu.vector_store %arg5[%c28, %c0_14], %18 {strides = array<i32>} : memref<36x288xf32, #tpu.memory_space<vmem>>, vector<4x288xf32>,
    %20 = vector.extract_strided_slice %3 {offsets = [0, 38], sizes = [4, 288], strides = [1, 1]} : vector<4x326xf32> to vector<4x288xf32>
    %c32 = arith.constant 32 : index
    %c0_15 = arith.constant 0 : index
    %21 = vector.load %arg5[%c32, %c0_15] : memref<36x288xf32, #tpu.memory_space<vmem>>, vector<4x288xf32>
    tpu.vector_store %arg5[%c32, %c0_15], %20 {strides = array<i32>} : memref<36x288xf32, #tpu.memory_space<vmem>>, vector<4x288xf32>,
    %c0_16 = arith.constant 0 : index
    %c0_17 = arith.constant 0 : index
    %22 = vector.load %arg5[%c0_16, %c0_17] : memref<36x288xf32, #tpu.memory_space<vmem>>, vector<36x288xf32>
    %cst = arith.constant dense<0.000000e+00> : vector<8x288xf32>
    %23 = tpu.matmul %0, %22, %cst {dimension_numbers = #tpu.dot_dimension_numbers<[1], [0], [0], [1], [0, 0, 1, 1], [], []>} : vector<8x36xf32>, vector<36x288xf32>, vector<8x288xf32> -> vector<8x288xf32>
    %24 = vector.broadcast %1 : vector<8x1xf32> to vector<8x288xf32>
    %25 = arith.addf %23, %24 : vector<8x288xf32>
    %c0_18 = arith.constant 0 : index
    %c0_19 = arith.constant 0 : index
    %c0_20 = arith.constant 0 : index
    %26 = vector.load %arg4[%c0_18, %c0_19, %c0_20] : memref<2x8x288xf32, #tpu.memory_space<vmem>>, vector<1x8x288xf32>
    %27 = vector.shape_cast %26 : vector<1x8x288xf32> to vector<8x288xf32>
    %28 = vector.shape_cast %25 : vector<8x288xf32> to vector<1x8x288xf32>
    tpu.vector_store %arg4[%c0_18, %c0_19, %c0_20], %28 {strides = array<i32>} : memref<2x8x288xf32, #tpu.memory_space<vmem>>, vector<1x8x288xf32>,
    %c1 = arith.constant 1 : index
    %c0_21 = arith.constant 0 : index
    %c0_22 = arith.constant 0 : index
    %29 = vector.load %arg1[%c1, %c0_21, %c0_22] : memref<2x4x326xf32, #tpu.memory_space<vmem>>, vector<1x4x326xf32>
    %30 = vector.shape_cast %29 : vector<1x4x326xf32> to vector<4x326xf32>
    %31 = vector.extract_strided_slice %30 {offsets = [0, 0], sizes = [4, 288], strides = [1, 1]} : vector<4x326xf32> to vector<4x288xf32>
    %c0_23 = arith.constant 0 : index
    %c0_24 = arith.constant 0 : index
    %32 = vector.load %arg5[%c0_23, %c0_24] : memref<36x288xf32, #tpu.memory_space<vmem>>, vector<4x288xf32>
    tpu.vector_store %arg5[%c0_23, %c0_24], %31 {strides = array<i32>} : memref<36x288xf32, #tpu.memory_space<vmem>>, vector<4x288xf32>,
    %33 = vector.extract_strided_slice %30 {offsets = [0, 1], sizes = [4, 288], strides = [1, 1]} : vector<4x326xf32> to vector<4x288xf32>
    %c4_25 = arith.constant 4 : index
    %c0_26 = arith.constant 0 : index
    %34 = vector.load %arg5[%c4_25, %c0_26] : memref<36x288xf32, #tpu.memory_space<vmem>>, vector<4x288xf32>
    tpu.vector_store %arg5[%c4_25, %c0_26], %33 {strides = array<i32>} : memref<36x288xf32, #tpu.memory_space<vmem>>, vector<4x288xf32>,
    %35 = vector.extract_strided_slice %30 {offsets = [0, 2], sizes = [4, 288], strides = [1, 1]} : vector<4x326xf32> to vector<4x288xf32>
    %c8_27 = arith.constant 8 : index
    %c0_28 = arith.constant 0 : index
    %36 = vector.load %arg5[%c8_27, %c0_28] : memref<36x288xf32, #tpu.memory_space<vmem>>, vector<4x288xf32>
    tpu.vector_store %arg5[%c8_27, %c0_28], %35 {strides = array<i32>} : memref<36x288xf32, #tpu.memory_space<vmem>>, vector<4x288xf32>,
    %37 = vector.extract_strided_slice %30 {offsets = [0, 18], sizes = [4, 288], strides = [1, 1]} : vector<4x326xf32> to vector<4x288xf32>
    %c12_29 = arith.constant 12 : index
    %c0_30 = arith.constant 0 : index
    %38 = vector.load %arg5[%c12_29, %c0_30] : memref<36x288xf32, #tpu.memory_space<vmem>>, vector<4x288xf32>
    tpu.vector_store %arg5[%c12_29, %c0_30], %37 {strides = array<i32>} : memref<36x288xf32, #tpu.memory_space<vmem>>, vector<4x288xf32>,
    %39 = vector.extract_strided_slice %30 {offsets = [0, 19], sizes = [4, 288], strides = [1, 1]} : vector<4x326xf32> to vector<4x288xf32>
    %c16_31 = arith.constant 16 : index
    %c0_32 = arith.constant 0 : index
    %40 = vector.load %arg5[%c16_31, %c0_32] : memref<36x288xf32, #tpu.memory_space<vmem>>, vector<4x288xf32>
    tpu.vector_store %arg5[%c16_31, %c0_32], %39 {strides = array<i32>} : memref<36x288xf32, #tpu.memory_space<vmem>>, vector<4x288xf32>,
    %41 = vector.extract_strided_slice %30 {offsets = [0, 20], sizes = [4, 288], strides = [1, 1]} : vector<4x326xf32> to vector<4x288xf32>
    %c20_33 = arith.constant 20 : index
    %c0_34 = arith.constant 0 : index
    %42 = vector.load %arg5[%c20_33, %c0_34] : memref<36x288xf32, #tpu.memory_space<vmem>>, vector<4x288xf32>
    tpu.vector_store %arg5[%c20_33, %c0_34], %41 {strides = array<i32>} : memref<36x288xf32, #tpu.memory_space<vmem>>, vector<4x288xf32>,
    %43 = vector.extract_strided_slice %30 {offsets = [0, 36], sizes = [4, 288], strides = [1, 1]} : vector<4x326xf32> to vector<4x288xf32>
    %c24_35 = arith.constant 24 : index
    %c0_36 = arith.constant 0 : index
    %44 = vector.load %arg5[%c24_35, %c0_36] : memref<36x288xf32, #tpu.memory_space<vmem>>, vector<4x288xf32>
    tpu.vector_store %arg5[%c24_35, %c0_36], %43 {strides = array<i32>} : memref<36x288xf32, #tpu.memory_space<vmem>>, vector<4x288xf32>,
    %45 = vector.extract_strided_slice %30 {offsets = [0, 37], sizes = [4, 288], strides = [1, 1]} : vector<4x326xf32> to vector<4x288xf32>
    %c28_37 = arith.constant 28 : index
    %c0_38 = arith.constant 0 : index
    %46 = vector.load %arg5[%c28_37, %c0_38] : memref<36x288xf32, #tpu.memory_space<vmem>>, vector<4x288xf32>
    tpu.vector_store %arg5[%c28_37, %c0_38], %45 {strides = array<i32>} : memref<36x288xf32, #tpu.memory_space<vmem>>, vector<4x288xf32>,
    %47 = vector.extract_strided_slice %30 {offsets = [0, 38], sizes = [4, 288], strides = [1, 1]} : vector<4x326xf32> to vector<4x288xf32>
    %c32_39 = arith.constant 32 : index
    %c0_40 = arith.constant 0 : index
    %48 = vector.load %arg5[%c32_39, %c0_40] : memref<36x288xf32, #tpu.memory_space<vmem>>, vector<4x288xf32>
    tpu.vector_store %arg5[%c32_39, %c0_40], %47 {strides = array<i32>} : memref<36x288xf32, #tpu.memory_space<vmem>>, vector<4x288xf32>,
    %c0_41 = arith.constant 0 : index
    %c0_42 = arith.constant 0 : index
    %49 = vector.load %arg5[%c0_41, %c0_42] : memref<36x288xf32, #tpu.memory_space<vmem>>, vector<36x288xf32>
    %cst_43 = arith.constant dense<0.000000e+00> : vector<8x288xf32>
    %50 = tpu.matmul %0, %49, %cst_43 {dimension_numbers = #tpu.dot_dimension_numbers<[1], [0], [0], [1], [0, 0, 1, 1], [], []>} : vector<8x36xf32>, vector<36x288xf32>, vector<8x288xf32> -> vector<8x288xf32>
    %51 = vector.broadcast %1 : vector<8x1xf32> to vector<8x288xf32>
    %52 = arith.addf %50, %51 : vector<8x288xf32>
    %c1_44 = arith.constant 1 : index
    %c0_45 = arith.constant 0 : index
    %c0_46 = arith.constant 0 : index
    %53 = vector.load %arg4[%c1_44, %c0_45, %c0_46] : memref<2x8x288xf32, #tpu.memory_space<vmem>>, vector<1x8x288xf32>
    %54 = vector.shape_cast %53 : vector<1x8x288xf32> to vector<8x288xf32>
    %55 = vector.shape_cast %52 : vector<8x288xf32> to vector<1x8x288xf32>
    tpu.vector_store %arg4[%c1_44, %c0_45, %c0_46], %55 {strides = array<i32>} : memref<2x8x288xf32, #tpu.memory_space<vmem>>, vector<1x8x288xf32>,
    return
  }
  func.func @transform_0(%arg0: i32) -> (i32, i32, i32) {
    %c0_i32 = arith.constant 0 : i32
    %c0_i32_0 = arith.constant 0 : i32
    %c0_i32_1 = arith.constant 0 : i32
    return %arg0, %c0_i32, %c0_i32_0 : i32, i32, i32
  }
  func.func @transform_1(%arg0: i32) -> (i32, i32) {
    %c0_i32 = arith.constant 0 : i32
    %c0_i32_0 = arith.constant 0 : i32
    %c0_i32_1 = arith.constant 0 : i32
    return %c0_i32, %c0_i32_0 : i32, i32
  }
  func.func @transform_2(%arg0: i32) -> (i32, i32) {
    %c0_i32 = arith.constant 0 : i32
    %c0_i32_0 = arith.constant 0 : i32
    %c0_i32_1 = arith.constant 0 : i32
    return %c0_i32, %c0_i32_0 : i32, i32
  }
  func.func @transform_3(%arg0: i32) -> (i32, i32, i32) {
    %c0_i32 = arith.constant 0 : i32
    %c0_i32_0 = arith.constant 0 : i32
    %c0_i32_1 = arith.constant 0 : i32
    return %arg0, %c0_i32, %c0_i32_0 : i32, i32, i32
  }
}

</mosaic_0001>

<bundles_post_ra>
// kernel: _lambda_.1
= control target key start
LH: loop header
LB: loop body
LE: loop exit
PB: predicated region body
PF: predicated region fallthrough
CT: control target
= control target key end

     0   :  { %vm24_vm0 = vcmask 257024   ;;  %s725_s16 = smov 126   ;;  %s726_s17 = smov 127   ;;  %v727_v4 = vmov 0.0|0.0   ;;  %v733_v6 = vmov 0.0   ;;  %vm735_vm1 = vmmov 0   ;;  %s934_s0 = inlined_call_operand.vmem [shape: f32[2,4,326], index: 0, kind: input, shape index: {}]   ;;  %s935_s2 = inlined_call_operand.vmem [shape: f32[8,1], index: 2, kind: input, shape index: {}]   ;;  %s936_s1 = inlined_call_operand.vmem [shape: f32[8,36], index: 1, kind: input, shape index: {}]   ;;  %s937_s3 = inlined_call_operand.vmem [shape: f32[2,8,288], index: 3, kind: output, shape index: {}]  }
   0x1   :  { %v17_v0 = vld [vmem:[%s934_s0 + $0x8] sm:$0xf]  ;;  %v16_v1 = vld [vmem:[%s934_s0] sm:$0xff]  ;;  %686 = vmatprep.subr.bf16.mxu1 %v727_v4  ;;  %s728_s18 = smov 110   ;;  %s729_s19 = smov 109   ;;  %247 = vmatprep.mubr.f32.mxu0 %v733_v6  ;;  %v791_v7 = vld [vmem:[%s934_s0 + $0xc] sm:$0xff] }
   0x2   :  { %48 = vrot.lane.b32.xlu1 %v17_v0, %s725_s16  ;;  %22 = vst [vmem:[#allocation2] sm:$0xf] %v16_v1  ;;  %30 = vrot.lane.b32.xlu0 %v16_v1, %s726_s17  ;;  %v27_v2 = vcombine.low %v17_v0, %v17_v0  ;;  %v20_v3 = vcombine.high %v16_v1, %v16_v1  ;;  %25 = vst.msk [vmem:[#allocation2 + $0x10] sm:$0xf] %vm24_vm0, %v17_v0  ;;  %s730_s20 = smov 108   ;;  %s731_s21 = smov 92  }
   0x3   :  { %v26_v5 = vcombine.low %v16_v1, %v16_v1  ;;  %s732_s22 = smov 91   ;;  %s734_s23 = smov 90   ;;  %v631_v8 = vld [vmem:[%s934_s0 + $0x14] sm:$0xf]  ;;  %v333_v10 = vcombine.high %v791_v7, %v791_v7  ;;  %662 = vmatprep.mubr.msk.f32.mxu1 %vm735_vm1, %v733_v6  ;;  %v338_v11 = vcombine.low %v791_v7, %v791_v7  ;;  %v736_v12 = vmov 0   ;;  %v15_v13 = vld [vmem:[%s935_s2] sm:$0xff] }
   0x4   :  { %23 = vst [vmem:[#allocation2 + $0x8] sm:$0xf] %v20_v3  ;;  %v339_v9 = vcombine.low %v631_v8, %v631_v8  ;;  %718 = vset.pattern.permute.xlu0 %v736_v12  ;;  %vm34_vm2 = vcmask 1039360   ;;  %vm42_vm3 = vcmask 261124   ;;  %vm50_vm4 = vcmask 1031168  }
   0x5   :  { %vm65_vm5 = vcmask 900096   ;;  %vm80_vm6 = vcmask 891904   ;;  %vm95_vm7 = vcmask 883712   ;;  %vm110_vm8 = vcmask 752640  }
   0x6   :  { %32 = vrot.lane.b32.xlu0 %v27_v2, %s726_s17  ;;  %46 = vrot.lane.b32.xlu1 %v20_v3, %s725_s16  ;;  %vm125_vm9 = vcmask 744448   ;;  %vm140_vm10 = vcmask 736256   ;;  %vm173_vm11 = vcmask 1043456   ;;  %vm169_vm12 = vcmask 293888  }
   0x7   :  { %vm326_vm13 = vcmask 261120  }
   0xa   :  { %61 = vrot.lane.b32.xlu0 %v16_v1, %s728_s18  ;;  %63 = vrot.lane.b32.xlu1 %v27_v2, %s728_s18 }
   0xe   :  { %28 = vrot.lane.b32.xlu0 %v26_v5, %s726_s17  ;;  %44 = vrot.lane.b32.xlu1 %v16_v1, %s725_s16 }
  0x12   :  { %59 = vrot.lane.b32.xlu0 %v26_v5, %s728_s18  ;;  %76 = vrot.lane.b32.xlu1 %v20_v3, %s729_s19 }
  0x16   :  { %78 = vrot.lane.b32.xlu0 %v17_v0, %s729_s19  ;;  %91 = vrot.lane.b32.xlu1 %v16_v1, %s730_s20 }
  0x1a   :  { %93 = vrot.lane.b32.xlu0 %v27_v2, %s730_s20  ;;  %106 = vrot.lane.b32.xlu1 %v20_v3, %s731_s21 }
  0x1e   :  { %108 = vrot.lane.b32.xlu0 %v17_v0, %s731_s21  ;;  %121 = vrot.lane.b32.xlu1 %v16_v1, %s732_s22 }
  0x22   :  { %123 = vrot.lane.b32.xlu0 %v27_v2, %s732_s22  ;;  %74 = vrot.lane.b32.xlu1 %v16_v1, %s729_s19 }
  0x26   :  { %89 = vrot.lane.b32.xlu0 %v26_v5, %s730_s20  ;;  %104 = vrot.lane.b32.xlu1 %v16_v1, %s731_s21 }
  0x2a   :  { %119 = vrot.lane.b32.xlu0 %v26_v5, %s732_s22  ;;  %136 = vrot.lane.b32.xlu1 %v20_v3, %s734_s23 }
  0x2e   :  { %138 = vrot.lane.b32.xlu0 %v17_v0, %s734_s23  ;;  %342 = vrot.lane.b32.xlu1 %v791_v7, %s726_s17 }
  0x32   :  { %344 = vrot.lane.b32.xlu0 %v339_v9, %s726_s17  ;;  %356 = vrot.lane.b32.xlu1 %v333_v10, %s725_s16 }
  0x36   :  { %358 = vrot.lane.b32.xlu0 %v631_v8, %s725_s16  ;;  %370 = vrot.lane.b32.xlu1 %v791_v7, %s728_s18 }
  0x3a   :  { %372 = vrot.lane.b32.xlu0 %v339_v9, %s728_s18  ;;  %134 = vrot.lane.b32.xlu1 %v16_v1, %s734_s23 }
  0x3e   :  { %340 = vrot.lane.b32.xlu0 %v338_v11, %s726_s17  ;;  %354 = vrot.lane.b32.xlu1 %v791_v7, %s725_s16 }
  0x42   :  { %368 = vrot.lane.b32.xlu0 %v338_v11, %s728_s18  ;;  %384 = vrot.lane.b32.xlu1 %v333_v10, %s729_s19 }
  0x46   :  { %386 = vrot.lane.b32.xlu0 %v631_v8, %s729_s19  ;;  %398 = vrot.lane.b32.xlu1 %v791_v7, %s730_s20 }
  0x4a   :  { %400 = vrot.lane.b32.xlu0 %v339_v9, %s730_s20  ;;  %412 = vrot.lane.b32.xlu1 %v333_v10, %s731_s21 }
  0x4e   :  { %414 = vrot.lane.b32.xlu0 %v631_v8, %s731_s21  ;;  %426 = vrot.lane.b32.xlu1 %v791_v7, %s732_s22 }
  0x52   :  { %428 = vrot.lane.b32.xlu0 %v339_v9, %s732_s22  ;;  %382 = vrot.lane.b32.xlu1 %v791_v7, %s729_s19 }
  0x56   :  { %396 = vrot.lane.b32.xlu0 %v338_v11, %s730_s20  ;;  %410 = vrot.lane.b32.xlu1 %v791_v7, %s731_s21 }
  0x5a   :  { %424 = vrot.lane.b32.xlu0 %v338_v11, %s732_s22  ;;  %440 = vrot.lane.b32.xlu1 %v333_v10, %s734_s23 }
  0x5e   :  { %442 = vrot.lane.b32.xlu0 %v631_v8, %s734_s23  ;;  %438 = vrot.lane.b32.xlu1 %v791_v7, %s734_s23 }
  0x62   :  { %166 = vperm.xlu0 %718, %v15_v13  }
  0x74   :  { %v49_v14 = vpop.permute.xlu1 %48  ;;  %v31_v15 = vpop.permute.xlu0 %30 }
  0x75   :  { %58 = vst.msk [vmem:[#allocation2 + $0x28] sm:$0xf] %vm24_vm0, %v49_v14 }
  0x78   :  { %v33_v16 = vpop.permute.xlu0 %32  ;;  %v47_v17 = vpop.permute.xlu1 %46 }
  0x79   :  { %v36_v18 = vsel %vm34_vm2, %v31_v15, %v33_v16  ;;  %43 = vst.msk [vmem:[#allocation2 + $0x10] sm:$0xf0] %vm42_vm3, %v33_v16  ;;  %v52_v19 = vsel %vm50_vm4, %v47_v17, %v49_v14 }
  0x7a   :  { %41 = vst [vmem:[#allocation2 + $0x8] sm:$0xf0] %v36_v18  ;;  %57 = vst [vmem:[#allocation2 + $0x20] sm:$0xf] %v52_v19 }
  0x7c   :  { %v62_v20 = vpop.permute.xlu0 %61  ;;  %v64_v21 = vpop.permute.xlu1 %63 }
  0x7d   :  { %v67_v22 = vsel %vm65_vm5, %v62_v20, %v64_v21  ;;  %73 = vst.msk [vmem:[#allocation2 + $0x28] sm:$0xf0] %vm42_vm3, %v64_v21 }
  0x7e   :  { %72 = vst [vmem:[#allocation2 + $0x20] sm:$0xf0] %v67_v22 }
  0x80   :  { %v29_v23 = vpop.permute.xlu0 %28  ;;  %v45_v24 = vpop.permute.xlu1 %44  ;;  %v151_v25 = vld [vmem:[#allocation2 + $0x10] sm:$0xff] }
  0x81   :  { %v35_v26 = vsel %vm34_vm2, %v29_v23, %v31_v15  ;;  %v51_v27 = vsel %vm50_vm4, %v45_v24, %v47_v17  ;;  %337 = vst.msk [vmem:[#allocation2 + $0x10] sm:$0xf] %vm24_vm0, %v631_v8  ;;  %v150_v28 = vld [vmem:[#allocation2 + $0x8] sm:$0xff]  ;;  %v871_v15 = vld [vmem:[%s936_s1] sm:$0xff] }
  0x82   :  { %40 = vst [vmem:[#allocation2] sm:$0xf0] %v35_v26  ;;  %56 = vst [vmem:[#allocation2 + $0x18] sm:$0xf] %v51_v27 }
  0x83   :  { %336 = vst [vmem:[#allocation2 + $0x8] sm:$0xf] %v333_v10 }
  0x84   :  { %v60_v29 = vpop.permute.xlu0 %59  ;;  %v77_v30 = vpop.permute.xlu1 %76  ;;  %v154_v31 = vld [vmem:[#allocation2 + $0x28] sm:$0xff] }
  0x85   :  { %v66_v32 = vsel %vm65_vm5, %v60_v29, %v62_v20  ;;  %v687_v33 = vpack.c.bf16 %v154_v31, %v151_v25  ;;  %v153_v34 = vld [vmem:[#allocation2 + $0x20] sm:$0xff] }
  0x86   :  { %71 = vst [vmem:[#allocation2 + $0x18] sm:$0xf0] %v66_v32  ;;  %v678_v35 = vpack.c.bf16 %v153_v34, %v150_v28 }
  0x87   :  { %688 = vmatpush3.bf16.msra.mxu1 %v687_v33 }
  0x88   :  { %v79_v36 = vpop.permute.xlu0 %78  ;;  %v92_v37 = vpop.permute.xlu1 %91  ;;  %679 = vmatprep.subr.bf16.mxu0 %v678_v35  ;;  %689 = vmatprep.subr.bf16.mxu1 %v727_v4 }
  0x89   :  { %v82_v38 = vsel %vm80_vm6, %v77_v30, %v79_v36  ;;  %88 = vst.msk [vmem:[#allocation2 + $0x40] sm:$0xf] %vm24_vm0, %v79_v36  ;;  %v149_v39 = vld [vmem:[#allocation2] sm:$0xff] }
  0x8a   :  { %87 = vst [vmem:[#allocation2 + $0x38] sm:$0xf] %v82_v38  ;;  %335 = vst [vmem:[#allocation2] sm:$0xf] %v791_v7 }
  0x8c   :  { %v94_v40 = vpop.permute.xlu0 %93  ;;  %v107_v41 = vpop.permute.xlu1 %106 }
  0x8d   :  { %v97_v42 = vsel %vm95_vm7, %v92_v37, %v94_v40  ;;  %103 = vst.msk [vmem:[#allocation2 + $0x40] sm:$0xf0] %vm42_vm3, %v94_v40  ;;  %v152_v43 = vld [vmem:[#allocation2 + $0x18] sm:$0xff] }
  0x8e   :  { %102 = vst [vmem:[#allocation2 + $0x38] sm:$0xf0] %v97_v42  ;;  %v680_v44 = vpack.c.bf16 %v152_v43, %v149_v39 }
  0x90   :  { %v109_v45 = vpop.permute.xlu0 %108  ;;  %v122_v46 = vpop.permute.xlu1 %121  ;;  %681 = vmatpush1.bf16.msra.mxu0 %v680_v44 }
  0x91   :  { %v112_v47 = vsel %vm110_vm8, %v107_v41, %v109_v45  ;;  %118 = vst.msk [vmem:[#allocation2 + $0x58] sm:$0xf] %vm24_vm0, %v109_v45 }
  0x92   :  { %117 = vst [vmem:[#allocation2 + $0x50] sm:$0xf] %v112_v47 }
  0x94   :  { %v124_v48 = vpop.permute.xlu0 %123  ;;  %v75_v49 = vpop.permute.xlu1 %74  ;;  %v157_v58 = vld [vmem:[#allocation2 + $0x40] sm:$0xff] }
  0x95   :  { %v127_v50 = vsel %vm125_vm9, %v122_v46, %v124_v48  ;;  %133 = vst.msk [vmem:[#allocation2 + $0x58] sm:$0xf0] %vm42_vm3, %v124_v48  ;;  %v81_v51 = vsel %vm80_vm6, %v75_v49, %v77_v30  ;;  %v156_v62 = vld [vmem:[#allocation2 + $0x38] sm:$0xff] }
  0x96   :  { %132 = vst [vmem:[#allocation2 + $0x50] sm:$0xf0] %v127_v50  ;;  %86 = vst [vmem:[#allocation2 + $0x30] sm:$0xf] %v81_v51 }
  0x98   :  { %v90_v52 = vpop.permute.xlu0 %89  ;;  %v105_v53 = vpop.permute.xlu1 %104 }
  0x99   :  { %v96_v54 = vsel %vm95_vm7, %v90_v52, %v92_v37  ;;  %v111_v55 = vsel %vm110_vm8, %v105_v53, %v107_v41 }
  0x9a   :  { %101 = vst [vmem:[#allocation2 + $0x30] sm:$0xf0] %v96_v54  ;;  %116 = vst [vmem:[#allocation2 + $0x48] sm:$0xf] %v111_v55 }
  0x9c   :  { %v120_v56 = vpop.permute.xlu0 %119  ;;  %v137_v57 = vpop.permute.xlu1 %136  ;;  %v160_v59 = vld [vmem:[#allocation2 + $0x58] sm:$0xff] }
  0x9d   :  { %v126_v60 = vsel %vm125_vm9, %v120_v56, %v122_v46  ;;  %v690_v61 = vpack.c.bf16 %v160_v59, %v157_v58  ;;  %v159_v63 = vld [vmem:[#allocation2 + $0x50] sm:$0xff] }
  0x9e   :  { %131 = vst [vmem:[#allocation2 + $0x48] sm:$0xf0] %v126_v60  ;;  %v682_v0 = vpack.c.bf16 %v159_v63, %v156_v62 }
  0x9f   :  { %691 = vmatpush3.bf16.msra.mxu1 %v690_v61 }
  0xa0   :  { %v139_v1 = vpop.permute.xlu0 %138  ;;  %v343_v2 = vpop.permute.xlu1 %342  ;;  %683 = vmatprep.subr.bf16.mxu0 %v682_v0  ;;  %660 = vmatprep.subr.mxu1 %v733_v6 }
  0xa1   :  { %v142_v3 = vsel %vm140_vm10, %v137_v57, %v139_v1  ;;  %148 = vst.msk [vmem:[#allocation2 + $0x70] sm:$0xf] %vm24_vm0, %v139_v1  ;;  %v155_v9 = vld [vmem:[#allocation2 + $0x30] sm:$0xff] }
  0xa2   :  { %147 = vst [vmem:[#allocation2 + $0x68] sm:$0xf] %v142_v3 }
  0xa4   :  { %v345_v5 = vpop.permute.xlu0 %344  ;;  %v357_v7 = vpop.permute.xlu1 %356 }
  0xa5   :  { %v347_v8 = vsel %vm34_vm2, %v343_v2, %v345_v5  ;;  %353 = vst.msk [vmem:[#allocation2 + $0x10] sm:$0xf0] %vm42_vm3, %v345_v5  ;;  %v158_v10 = vld [vmem:[#allocation2 + $0x48] sm:$0xff] }
  0xa6   :  { %352 = vst [vmem:[#allocation2 + $0x8] sm:$0xf0] %v347_v8  ;;  %v684_v11 = vpack.c.bf16 %v158_v10, %v155_v9 }
  0xa8   :  { %v359_v12 = vpop.permute.xlu0 %358  ;;  %v371_v13 = vpop.permute.xlu1 %370  ;;  %685 = vmatpush1.bf16.msra.mxu0 %v684_v11  ;;  %v163_v14 = vld [vmem:[#allocation2 + $0x70] sm:$0xf] }
  0xa9   :  { %v361_v16 = vsel %vm50_vm4, %v357_v7, %v359_v12  ;;  %367 = vst.msk [vmem:[#allocation2 + $0x28] sm:$0xf] %vm24_vm0, %v359_v12  ;;  %661 = vmatpush3.msk.msra.mxu1 %vm173_vm11, %v163_v14  ;;  %v162_v17 = vld [vmem:[#allocation2 + $0x68] sm:$0xf] }
  0xaa   :  { %366 = vst [vmem:[#allocation2 + $0x20] sm:$0xf] %v361_v16  ;;  %625 = vmatprep.subr.msk.mxu0 %vm173_vm11, %v162_v17  ;;  %700 = vmatprep.subr.bf16.mxu1 %v727_v4 }
  0xab   :  { %663 = vmatmul.mubr.msk.f32.vlgmr.msra.gmra.mrb[0].mxu1 %vm169_vm12, %v871_v15 }
  0xac   :  { %v373_v18 = vpop.permute.xlu0 %372  ;;  %v135_v19 = vpop.permute.xlu1 %134  ;;  %675 = vmatprep.mubr.msk.f32.mxu1 %vm735_vm1, %v733_v6  ;;  %v454_v28 = vld [vmem:[#allocation2 + $0x10] sm:$0xff] }
  0xad   :  { %v375_v20 = vsel %vm65_vm5, %v371_v13, %v373_v18  ;;  %381 = vst.msk [vmem:[#allocation2 + $0x28] sm:$0xf0] %vm42_vm3, %v373_v18  ;;  %v141_v21 = vsel %vm140_vm10, %v135_v19, %v137_v57  ;;  %v453_v33 = vld [vmem:[#allocation2 + $0x8] sm:$0xff] }
  0xae   :  { %380 = vst [vmem:[#allocation2 + $0x20] sm:$0xf0] %v375_v20  ;;  %146 = vst [vmem:[#allocation2 + $0x60] sm:$0xf] %v141_v21 }
  0xb0   :  { %v341_v22 = vpop.permute.xlu0 %340  ;;  %v355_v23 = vpop.permute.xlu1 %354 }
  0xb1   :  { %v346_v24 = vsel %vm34_vm2, %v341_v22, %v343_v2  ;;  %v360_v25 = vsel %vm50_vm4, %v355_v23, %v357_v7 }
  0xb2   :  { %351 = vst [vmem:[#allocation2] sm:$0xf0] %v346_v24  ;;  %365 = vst [vmem:[#allocation2 + $0x18] sm:$0xf] %v360_v25 }
  0xb4   :  { %v369_v26 = vpop.permute.xlu0 %368  ;;  %v385_v27 = vpop.permute.xlu1 %384  ;;  %v457_v29 = vld [vmem:[#allocation2 + $0x28] sm:$0xff] }
  0xb5   :  { %v374_v30 = vsel %vm65_vm5, %v369_v26, %v371_v13  ;;  %v161_v31 = vld [vmem:[#allocation2 + $0x60] sm:$0xf]  ;;  %v701_v32 = vpack.c.bf16 %v457_v29, %v454_v28 }
  0xb6   :  { %v456_v34 = vld [vmem:[#allocation2 + $0x20] sm:$0xff]  ;;  %379 = vst [vmem:[#allocation2 + $0x18] sm:$0xf0] %v374_v30  ;;  %626 = vmatpush1.msk.msra.mxu0 %vm173_vm11, %v161_v31 }
  0xb7   :  { %v692_v35 = vpack.c.bf16 %v456_v34, %v453_v33  ;;  %702 = vmatpush3.bf16.msra.mxu1 %v701_v32  ;;  %627 = vmatmul.mubr.msk.f32.vlgmr.msra.gmra.mrb[0].mxu0 %vm169_vm12, %v871_v15 }
  0xb8   :  { %v387_v36 = vpop.permute.xlu0 %386  ;;  %v399_v37 = vpop.permute.xlu1 %398  ;;  %703 = vmatprep.subr.bf16.mxu1 %v727_v4  ;;  %540 = vmatprep.mubr.f32.mxu0 %v733_v6 }
  0xb9   :  { %693 = vmatprep.subr.bf16.mxu0 %v692_v35  ;;  %v389_v38 = vsel %vm80_vm6, %v385_v27, %v387_v36  ;;  %395 = vst.msk [vmem:[#allocation2 + $0x40] sm:$0xf] %vm24_vm0, %v387_v36  ;;  %v452_v42 = vld [vmem:[#allocation2] sm:$0xff] }
  0xba   :  { %394 = vst [vmem:[#allocation2 + $0x38] sm:$0xf] %v389_v38 }
  0xbc   :  { %v401_v39 = vpop.permute.xlu0 %400  ;;  %v413_v40 = vpop.permute.xlu1 %412 }
  0xbd   :  { %v403_v41 = vsel %vm95_vm7, %v399_v37, %v401_v39  ;;  %409 = vst.msk [vmem:[#allocation2 + $0x40] sm:$0xf0] %vm42_vm3, %v401_v39  ;;  %v455_v43 = vld [vmem:[#allocation2 + $0x18] sm:$0xff] }
  0xbe   :  { %408 = vst [vmem:[#allocation2 + $0x38] sm:$0xf0] %v403_v41  ;;  %v694_v44 = vpack.c.bf16 %v455_v43, %v452_v42 }
  0xc0   :  { %v415_v45 = vpop.permute.xlu0 %414  ;;  %v427_v46 = vpop.permute.xlu1 %426  ;;  %695 = vmatpush1.bf16.msra.mxu0 %v694_v44 }
  0xc1   :  { %v417_v4 = vsel %vm110_vm8, %v413_v40, %v415_v45  ;;  %423 = vst.msk [vmem:[#allocation2 + $0x58] sm:$0xf] %vm24_vm0, %v415_v45 }
  0xc2   :  { %422 = vst [vmem:[#allocation2 + $0x50] sm:$0xf] %v417_v4 }
  0xc4   :  { %v429_v47 = vpop.permute.xlu0 %428  ;;  %v383_v48 = vpop.permute.xlu1 %382  ;;  %v460_v57 = vld [vmem:[#allocation2 + $0x40] sm:$0xff] }
  0xc5   :  { %v431_v49 = vsel %vm125_vm9, %v427_v46, %v429_v47  ;;  %437 = vst.msk [vmem:[#allocation2 + $0x58] sm:$0xf0] %vm42_vm3, %v429_v47  ;;  %v388_v50 = vsel %vm80_vm6, %v383_v48, %v385_v27  ;;  %v459_v61 = vld [vmem:[#allocation2 + $0x38] sm:$0xff] }
  0xc6   :  { %436 = vst [vmem:[#allocation2 + $0x50] sm:$0xf0] %v431_v49  ;;  %393 = vst [vmem:[#allocation2 + $0x30] sm:$0xf] %v388_v50 }
  0xc8   :  { %v397_v51 = vpop.permute.xlu0 %396  ;;  %v411_v52 = vpop.permute.xlu1 %410 }
  0xc9   :  { %v402_v53 = vsel %vm95_vm7, %v397_v51, %v399_v37  ;;  %v416_v54 = vsel %vm110_vm8, %v411_v52, %v413_v40 }
  0xca   :  { %407 = vst [vmem:[#allocation2 + $0x30] sm:$0xf0] %v402_v53  ;;  %421 = vst [vmem:[#allocation2 + $0x48] sm:$0xf] %v416_v54 }
  0xcc   :  { %v425_v55 = vpop.permute.xlu0 %424  ;;  %v441_v56 = vpop.permute.xlu1 %440  ;;  %v463_v58 = vld [vmem:[#allocation2 + $0x58] sm:$0xff] }
  0xcd   :  { %v430_v59 = vsel %vm125_vm9, %v425_v55, %v427_v46  ;;  %v704_v60 = vpack.c.bf16 %v463_v58, %v460_v57  ;;  %v462_v62 = vld [vmem:[#allocation2 + $0x50] sm:$0xff] }
  0xce   :  { %435 = vst [vmem:[#allocation2 + $0x48] sm:$0xf0] %v430_v59  ;;  %v696_v63 = vpack.c.bf16 %v462_v62, %v459_v61 }
  0xcf   :  { %705 = vmatpush3.bf16.msra.mxu1 %v704_v60 }
  0xd0   :  { %v443_v0 = vpop.permute.xlu0 %442  ;;  %v439_v1 = vpop.permute.xlu1 %438  ;;  %697 = vmatprep.subr.bf16.mxu0 %v696_v63  ;;  %673 = vmatprep.subr.mxu1 %v733_v6 }
  0xd1   :  { %v445_v2 = vsel %vm140_vm10, %v441_v56, %v443_v0  ;;  %451 = vst.msk [vmem:[#allocation2 + $0x70] sm:$0xf] %vm24_vm0, %v443_v0  ;;  %v444_v3 = vsel %vm140_vm10, %v439_v1, %v441_v56  ;;  %v458_v5 = vld [vmem:[#allocation2 + $0x30] sm:$0xff] }
  0xd2   :  { %450 = vst [vmem:[#allocation2 + $0x68] sm:$0xf] %v445_v2  ;;  %449 = vst [vmem:[#allocation2 + $0x60] sm:$0xf] %v444_v3 }
  0xd5   :  { %v461_v7 = vld [vmem:[#allocation2 + $0x48] sm:$0xff] }
  0xd6   :  { %v698_v8 = vpack.c.bf16 %v461_v7, %v458_v5 }
  0xd8   :  { %699 = vmatpush1.bf16.msra.mxu0 %v698_v8  ;;  %v466_v9 = vld [vmem:[#allocation2 + $0x70] sm:$0xf] }
  0xd9   :  { %v465_v10 = vld [vmem:[#allocation2 + $0x68] sm:$0xf]  ;;  %674 = vmatpush3.msk.msra.mxu1 %vm173_vm11, %v466_v9  ;;  %v464_v6 = vld [vmem:[#allocation2 + $0x60] sm:$0xf] }
  0xda   :  { %632 = vmatprep.subr.msk.mxu0 %vm173_vm11, %v465_v10  ;;  %676 = vmatmul.mubr.msk.f32.vlgmr.msra.gmra.mrb[2].mxu1 %vm169_vm12, %v871_v15 }
  0xdc   :  { %633 = vmatpush1.msk.msra.mxu0 %vm173_vm11, %v464_v6 }
  0xdd   :  { %634 = vmatmul.mubr.msk.f32.vlgmr.msra.gmra.mrb[2].mxu0 %vm169_vm12, %v871_v15 }
  0xe1   :  { %v167_v11 = vpop.permute.xlu0 %166 }
 0x17e   :  { %v320_v12 = vpop.f32.mrb[0].mxu1 }
 0x17f   :  { %v321_v13 = vadd.f32 %v320_v12, %v167_v11  ;;  %v664_v14 = vpop.f32.mrb[1].mxu1 }
 0x181   :  { %327 = vst.msk [vmem:[%s937_s3 + $0x10] sm:$0xff] %vm326_vm13, %v321_v13 }
 0x18a   :  { %v249_v16 = vpop.f32.mrb[0].mxu0 }
 0x18b   :  { %v250_v17 = vadd.f32 %v249_v16, %v167_v11  ;;  %v251_v18 = vpop.f32.mrb[1].mxu0 }
 0x18c   :  { %v252_v19 = vadd.f32 %v251_v18, %v167_v11 }
 0x18d   :  { %324 = vst [vmem:[%s937_s3] sm:$0xff] %v250_v17 }
 0x18e   :  { %325 = vst [vmem:[%s937_s3 + $0x8] sm:$0xff] %v252_v19 }
 0x1ad   :  { %v613_v15 = vpop.f32.mrb[2].mxu1 }
 0x1ae   :  { %v614_v20 = vadd.f32 %v613_v15, %v167_v11  ;;  %v677_v21 = vpop.f32.mrb[3].mxu1 }
 0x1b0   :  { %v542_v22 = vpop.f32.mrb[2].mxu0  ;;  %639 = vst.msk [vmem:[%s937_s3 + $0x28] sm:$0xff] %vm326_vm13, %v614_v20 }
 0x1b1   :  { %v543_v23 = vadd.f32 %v542_v22, %v167_v11  ;;  %v544_v24 = vpop.f32.mrb[3].mxu0 }
 0x1b2   :  { %v545_v25 = vadd.f32 %v544_v24, %v167_v11 }
 0x1b3   :  { %637 = vst [vmem:[%s937_s3 + $0x18] sm:$0xff] %v543_v23 }
 0x1b4   :  { %638 = vst [vmem:[%s937_s3 + $0x20] sm:$0xff] %v545_v25 }

</bundles_post_ra>
